<compile_context>
chip_gen: v7x
topology: tpu7x:2x2x1
jax: 0.10.0
libtpu: 0.0.40
codegen_flags: <defaults>
</compile_context>

<pallas_src>
import math

import jax
import jax.numpy as jnp
from jax.experimental import pallas as pl
from jax.experimental.pallas import tpu as pltpu

EPS = 1e-5  # nn.LayerNorm default


def _patch_merging_kernel(xe_ref, xo_ref, we_ref, wo_ref, s_ref, b_ref, o_ref):
    # xe_ref / xo_ref: (th, W2, 2C) raw activation blocks for the even-h / odd-h
    # rows of each 2x2 patch; channel layout per row is [w-even C | w-odd C].
    th, w2, c2 = xe_ref.shape
    rows = th * w2

    # The (th, W2, 2C) -> (th*W2, 2C) flatten is the only in-kernel relayout
    # (Mosaic matmuls want 2-D operands).
    # TODO(synk): use a rank-3 dot_general (contract the last axis) to drop this
    # relayout once Mosaic supports free non-contracting lhs dims.
    xe = xe_ref[...].reshape(rows, c2)
    xo = xo_ref[...].reshape(rows, c2)

    # One-pass LayerNorm statistics over the merged 4C channel (split across the
    # two halves): mean and E[x^2] -> rstd, always in f32.
    xef = xe.astype(jnp.float32)
    xof = xo.astype(jnp.float32)
    inv_c4 = 1.0 / (2.0 * c2)
    mean = (jnp.sum(xef, axis=-1, keepdims=True)
            + jnp.sum(xof, axis=-1, keepdims=True)) * inv_c4
    ex2 = (jnp.sum(xef * xef, axis=-1, keepdims=True)
           + jnp.sum(xof * xof, axis=-1, keepdims=True)) * inv_c4
    var = jnp.maximum(ex2 - mean * mean, 0.0)
    rstd = jax.lax.rsqrt(var + EPS)

    # MXU on the *raw* activations; LayerNorm + affine are applied afterwards to
    # the (2x narrower) matmul output:
    #   LN(x) @ W = rstd*(x @ W') - (rstd*mean)*colsum(W') + beta @ W
    mm = we_ref.dtype
    y = jnp.dot(xe.astype(mm), we_ref[...], preferred_element_type=jnp.float32)
    y = y + jnp.dot(xo.astype(mm), wo_ref[...], preferred_element_type=jnp.float32)
    y = y * rstd - (rstd * mean) * s_ref[...] + b_ref[...]

    o_ref[...] = y.astype(o_ref.dtype)


def _vmem_caps():
    """(tile-sizing budget, vmem_limit_bytes) for this TPU generation."""
    cap = None
    try:
        cap = getattr(pltpu.get_tpu_info(), "vmem_capacity_bytes", None)
    except Exception:
        cap = None
    if not cap or cap <= 0:
        cap = 64 * 1024 * 1024  # conservative default: v7x per-TensorCore VMEM
    budget = min(int(cap * 7 // 10), 80 * 1024 * 1024)   # working-set budget for tiling
    limit = min(int(cap * 9 // 10), 96 * 1024 * 1024)    # scoped VMEM limit
    return budget, limit


def patch_merging(x, gamma, beta, w_red, input_resolution, *, matmul_dtype=None):
    """x: (B, H*W, C) -> (B, H/2 * W/2, 2*C).  Matches PyTorch PatchMerging.forward.

    gamma, beta: LayerNorm(4C) affine params; w_red: (4C, 2C) reduction weight so
    that `LN(x_merged) @ w_red` matches the PyTorch Linear(4C, 2C, bias=False).
    matmul_dtype: dtype fed to the MXU (defaults to x.dtype; pass jnp.bfloat16 to
    use the native bf16 MXU path for f32 activations).
    """
    H, W = input_resolution
    B, L, C = x.shape
    assert L == H * W, "input feature has wrong size"
    assert H % 2 == 0 and W % 2 == 0, f"x size ({H}*{W}) are not even."

    H2, W2 = H // 2, W // 2
    C2 = 2 * C                       # per-half input width == output width
    R = B * H2                       # flattened (batch, merged-row) axis
    if matmul_dtype is None:
        matmul_dtype = x.dtype
    matmul_dtype = jnp.dtype(matmul_dtype)

    # ---- parameter prep (tiny, once per call, outside the kernel) ----
    w32 = w_red.astype(jnp.float32)                               # (4C, 2C)
    wp = gamma.astype(jnp.float32)[:, None] * w32                 # W' = diag(gamma) W
    s_fold = jnp.sum(wp, axis=0, keepdims=True)                   # colsum(W'), (1, 2C), f32
    b_fold = beta.astype(jnp.float32)[None, :] @ w32              # beta @ W,   (1, 2C), f32
    # even-h rows carry channels [x0 | x2]; odd-h rows carry [x1 | x3]
    w_even = jnp.concatenate([wp[0 * C:1 * C], wp[2 * C:3 * C]], axis=0).astype(matmul_dtype)
    w_odd = jnp.concatenate([wp[1 * C:2 * C], wp[3 * C:4 * C]], axis=0).astype(matmul_dtype)

    # ---- free contiguous views: no HBM gather pre-pass, no output relayout ----
    xv = x.reshape(R, 2, W2, C2)      # (rows, h-parity, W/2, 2C)

    in_item = jnp.dtype(x.dtype).itemsize
    out_item = in_item
    mm_item = matmul_dtype.itemsize
    sub_out = max(8, 32 // out_item)  # sublane tile of the output dtype

    # Single-buffer the never-changing weights/bias only once double-buffering
    # them would waste meaningful VMEM (late Swin stages: 2C ~ 1024-2048).
    const_bytes = 2 * C2 * C2 * mm_item + 2 * C2 * 4
    single_buffer_consts = const_bytes >= (2 << 20)

    budget, vmem_limit = _vmem_caps()

    # ---- tile selection over the flattened row axis ----
    # The output block is (th*W2, 2C): its second-minor dim must be a multiple of
    # the sublane tile unless the block covers the full array, so th is a multiple
    # of g.  (Per-h strided input DMA chunks are W2*2C*itemsize bytes, >= 512 B for
    # every real Swin shape.)
    g = sub_out // math.gcd(W2, sub_out)

    def working_set(th_):
        rows = th_ * W2
        blk_in = rows * C2 * in_item                 # one parity half, one buffer
        blk_out = rows * C2 * out_item
        pipelined = 2 * (2 * blk_in) + 2 * blk_out   # double-buffered inputs + output
        consts = const_bytes * (1 if single_buffer_consts else 2)
        temps = 2 * rows * C2 * in_item              # in-kernel flatten relayouts
        temps += 2 * rows * C2 * (mm_item if mm_item != in_item else 0)
        temps += rows * C2 * 4                       # f32 matmul accumulator
        temps += rows * C2 * 4                       # squares / upcast headroom
        return pipelined + consts + temps

    bytes_per_hrow = W2 * (2 * C2 * in_item + C2 * out_item)
    th = max(8192 // max(W2, 1),                     # ~8K merged tokens per step
             (4 << 20) // max(bytes_per_hrow, 1),    # >= ~4 MiB HBM traffic per step
             1)
    th = min(th, R)
    if R >= 2:
        th = min(th, (R + 1) // 2)                   # keep >= 2 pipeline steps
    th = (th // g) * g
    if th <= 0:
        th = R                                       # single full block (constraint-exempt)
    else:
        while th > g and working_set(th) > budget:
            th = max(g, ((th // 2) // g) * g)
        if R % th != 0:                              # prefer a divisor of R (no partial tile)
            for d in range(th, max(g, (3 * th) // 4) - 1, -1):
                if d % g == 0 and R % d == 0:
                    th = d
                    break

    grid = (pl.cdiv(R, th),)

    def _const_spec(shape):
        if single_buffer_consts:
            return pl.BlockSpec(shape, lambda i: (0,) * len(shape),
                                pipeline_mode=pl.Buffered(1))
        return pl.BlockSpec(shape, lambda i: (0,) * len(shape))

    out = pl.pallas_call(
        _patch_merging_kernel,
        out_shape=jax.ShapeDtypeStruct((R * W2, C2), x.dtype),
        grid_spec=pltpu.PrefetchScalarGridSpec(
            num_scalar_prefetch=0,
            grid=grid,
            in_specs=[
                # even-h rows of the 2x2 patches ([x0 | x2])
                pl.BlockSpec((th, None, W2, C2), lambda i: (i, 0, 0, 0)),
                # odd-h rows ([x1 | x3])
                pl.BlockSpec((th, None, W2, C2), lambda i: (i, 1, 0, 0)),
                _const_spec((C2, C2)),   # w_even (resident)
                _const_spec((C2, C2)),   # w_odd  (resident)
                _const_spec((1, C2)),    # colsum(W')
                _const_spec((1, C2)),    # beta @ W
            ],
            out_specs=pl.BlockSpec((th * W2, C2), lambda i: (i, 0)),
        ),
        compiler_params=pltpu.CompilerParams(
            dimension_semantics=("parallel",),
            vmem_limit_bytes=vmem_limit,
        ),
    )(xv, xv, w_even, w_odd, s_fold, b_fold)

    return out.reshape(B, H2 * W2, C2)


def patch_merging_ref(x, gamma, beta, w_red, input_resolution):
    """Pure-JAX reference matching the PyTorch forward."""
    H, W = input_resolution
    B, L, C = x.shape
    xv = x.reshape(B, H, W, C)
    x0 = xv[:, 0::2, 0::2, :]
    x1 = xv[:, 1::2, 0::2, :]
    x2 = xv[:, 0::2, 1::2, :]
    x3 = xv[:, 1::2, 1::2, :]
    xm = jnp.concatenate([x0, x1, x2, x3], axis=-1).reshape(B, -1, 4 * C)
    xm = xm.astype(jnp.float32)
    mean = jnp.mean(xm, axis=-1, keepdims=True)
    var = jnp.mean((xm - mean) ** 2, axis=-1, keepdims=True)
    xn = (xm - mean) / jnp.sqrt(var + EPS)
    y = xn * gamma + beta
    return (y @ w_red.astype(jnp.float32)).astype(x.dtype)


if __name__ == "__main__":
    key = jax.random.PRNGKey(0)

    def make_params(k, dim):
        kg, kb, kw = jax.random.split(k, 3)
        gamma = 1.0 + 0.02 * jax.random.normal(kg, (4 * dim,), dtype=jnp.float32)  # norm.weight
        beta = 0.02 * jax.random.normal(kb, (4 * dim,), dtype=jnp.float32)         # norm.bias
        w_red = 0.02 * jax.random.normal(kw, (4 * dim, 2 * dim), dtype=jnp.float32)
        return gamma, beta, w_red

    # 1) Small config matching the module: B=2, 8x8, dim=32 -> multi-step grid.
    k1, k2 = jax.random.split(key)
    B, H, Wd, dim = 2, 8, 8, 32
    x1 = jax.random.normal(k1, (B, H * Wd, dim), dtype=jnp.float32)
    g1, b1, w1 = make_params(k2, dim)
    out1 = jax.block_until_ready(patch_merging(x1, g1, b1, w1, (H, Wd)))
    ref1 = patch_merging_ref(x1, g1, b1, w1, (H, Wd))
    assert out1.shape == (B, (H // 2) * (Wd // 2), 2 * dim)
    assert jnp.allclose(out1, ref1, atol=2e-3, rtol=2e-3), float(jnp.max(jnp.abs(out1 - ref1)))

    # 2) Swin-like stage: B=1, 28x28, dim=96 -> W/2=14 (not a multiple of 8),
    #    multi-step grid with a partial last tile.
    k3, k4 = jax.random.split(k2)
    B, H, Wd, dim = 1, 28, 28, 96
    x2 = jax.random.normal(k3, (B, H * Wd, dim), dtype=jnp.float32)
    g2, b2, w2 = make_params(k4, dim)
    out2 = jax.block_until_ready(patch_merging(x2, g2, b2, w2, (H, Wd)))
    ref2 = patch_merging_ref(x2, g2, b2, w2, (H, Wd))
    assert out2.shape == (B, (H // 2) * (Wd // 2), 2 * dim)
    assert jnp.allclose(out2, ref2, atol=2e-3, rtol=2e-3), float(jnp.max(jnp.abs(out2 - ref2)))

    # 3) Same data on the bf16 MXU path for f32 activations (looser tolerance).
    out3 = jax.block_until_ready(
        patch_merging(x2, g2, b2, w2, (H, Wd), matmul_dtype=jnp.bfloat16))
    assert jnp.allclose(out3, ref2, atol=5e-2, rtol=5e-2), float(jnp.max(jnp.abs(out3 - ref2)))

    print("KERNEL_OK")
</pallas_src>

<mosaic_0001>
module attributes {stable_mosaic.version = 11 : i64} {
  func.func @_patch_merging_kernel(%arg0: i32, %arg1: memref<4x1x4x64xf32, #tpu.memory_space<vmem>>, %arg2: memref<4x1x4x64xf32, #tpu.memory_space<vmem>>, %arg3: memref<64x64xf32, #tpu.memory_space<vmem>>, %arg4: memref<64x64xf32, #tpu.memory_space<vmem>>, %arg5: memref<1x64xf32, #tpu.memory_space<vmem>>, %arg6: memref<1x64xf32, #tpu.memory_space<vmem>>, %arg7: memref<16x64xf32, #tpu.memory_space<vmem>>) attributes {dimension_semantics = [#tpu.dimension_semantics<parallel>], iteration_bounds = array<i64: 2>, scalar_prefetch = 0 : i64, scratch_operands = 0 : i64, tpu.core_type = #tpu.core_type<tc>, window_params = [{transform_indices = @transform_0, window_bounds = array<i64: 4, 1, 4, 64>}, {transform_indices = @transform_1, window_bounds = array<i64: 4, 1, 4, 64>}, {pipeline_mode = #tpu.pipeline_mode<synchronous>, transform_indices = @transform_2, window_bounds = array<i64: 64, 64>}, {pipeline_mode = #tpu.pipeline_mode<synchronous>, transform_indices = @transform_3, window_bounds = array<i64: 64, 64>}, {pipeline_mode = #tpu.pipeline_mode<synchronous>, transform_indices = @transform_4, window_bounds = array<i64: 1, 64>}, {pipeline_mode = #tpu.pipeline_mode<synchronous>, transform_indices = @transform_5, window_bounds = array<i64: 1, 64>}, {transform_indices = @transform_6, window_bounds = array<i64: 16, 64>}]} {
    %c0 = arith.constant 0 : index
    %c0_0 = arith.constant 0 : index
    %c0_1 = arith.constant 0 : index
    %c0_2 = arith.constant 0 : index
    %0 = vector.load %arg1[%c0, %c0_0, %c0_1, %c0_2] : memref<4x1x4x64xf32, #tpu.memory_space<vmem>>, vector<4x1x4x64xf32>
    %1 = vector.shape_cast %0 : vector<4x1x4x64xf32> to vector<4x4x64xf32>
    %2 = vector.shape_cast %1 : vector<4x4x64xf32> to vector<16x64xf32>
    %c0_3 = arith.constant 0 : index
    %c0_4 = arith.constant 0 : index
    %c0_5 = arith.constant 0 : index
    %c0_6 = arith.constant 0 : index
    %3 = vector.load %arg2[%c0_3, %c0_4, %c0_5, %c0_6] : memref<4x1x4x64xf32, #tpu.memory_space<vmem>>, vector<4x1x4x64xf32>
    %4 = vector.shape_cast %3 : vector<4x1x4x64xf32> to vector<4x4x64xf32>
    %5 = vector.shape_cast %4 : vector<4x4x64xf32> to vector<16x64xf32>
    %cst = arith.constant dense<0.000000e+00> : vector<16xf32>
    %6 = vector.multi_reduction <add>, %2, %cst [1] : vector<16x64xf32> to vector<16xf32>
    %7 = vector.shape_cast %6 : vector<16xf32> to vector<16x1xf32>
    %cst_7 = arith.constant dense<0.000000e+00> : vector<16xf32>
    %8 = vector.multi_reduction <add>, %5, %cst_7 [1] : vector<16x64xf32> to vector<16xf32>
    %9 = vector.shape_cast %8 : vector<16xf32> to vector<16x1xf32>
    %10 = arith.addf %7, %9 : vector<16x1xf32>
    %cst_8 = arith.constant 7.812500e-03 : f32
    %11 = vector.broadcast %cst_8 : f32 to vector<16x1xf32>
    %12 = arith.mulf %10, %11 : vector<16x1xf32>
    %13 = arith.mulf %2, %2 : vector<16x64xf32>
    %cst_9 = arith.constant dense<0.000000e+00> : vector<16xf32>
    %14 = vector.multi_reduction <add>, %13, %cst_9 [1] : vector<16x64xf32> to vector<16xf32>
    %15 = vector.shape_cast %14 : vector<16xf32> to vector<16x1xf32>
    %16 = arith.mulf %5, %5 : vector<16x64xf32>
    %cst_10 = arith.constant dense<0.000000e+00> : vector<16xf32>
    %17 = vector.multi_reduction <add>, %16, %cst_10 [1] : vector<16x64xf32> to vector<16xf32>
    %18 = vector.shape_cast %17 : vector<16xf32> to vector<16x1xf32>
    %19 = arith.addf %15, %18 : vector<16x1xf32>
    %cst_11 = arith.constant 7.812500e-03 : f32
    %20 = vector.broadcast %cst_11 : f32 to vector<16x1xf32>
    %21 = arith.mulf %19, %20 : vector<16x1xf32>
    %22 = arith.mulf %12, %12 : vector<16x1xf32>
    %23 = arith.subf %21, %22 : vector<16x1xf32>
    %cst_12 = arith.constant 0.000000e+00 : f32
    %24 = vector.broadcast %cst_12 : f32 to vector<16x1xf32>
    %25 = arith.maximumf %23, %24 : vector<16x1xf32>
    %cst_13 = arith.constant 9.99999974E-6 : f32
    %26 = vector.broadcast %cst_13 : f32 to vector<16x1xf32>
    %27 = arith.addf %25, %26 : vector<16x1xf32>
    %28 = math.rsqrt %27 : vector<16x1xf32>
    %c0_14 = arith.constant 0 : index
    %c0_15 = arith.constant 0 : index
    %29 = vector.load %arg3[%c0_14, %c0_15] : memref<64x64xf32, #tpu.memory_space<vmem>>, vector<64x64xf32>
    %cst_16 = arith.constant dense<0.000000e+00> : vector<16x64xf32>
    %30 = tpu.matmul %2, %29, %cst_16 {dimension_numbers = #tpu.dot_dimension_numbers<[1], [0], [0], [1], [0, 0, 1, 1], [], []>} : vector<16x64xf32>, vector<64x64xf32>, vector<16x64xf32> -> vector<16x64xf32>
    %c0_17 = arith.constant 0 : index
    %c0_18 = arith.constant 0 : index
    %31 = vector.load %arg4[%c0_17, %c0_18] : memref<64x64xf32, #tpu.memory_space<vmem>>, vector<64x64xf32>
    %cst_19 = arith.constant dense<0.000000e+00> : vector<16x64xf32>
    %32 = tpu.matmul %5, %31, %cst_19 {dimension_numbers = #tpu.dot_dimension_numbers<[1], [0], [0], [1], [0, 0, 1, 1], [], []>} : vector<16x64xf32>, vector<64x64xf32>, vector<16x64xf32> -> vector<16x64xf32>
    %33 = arith.addf %30, %32 : vector<16x64xf32>
    %34 = vector.broadcast %28 : vector<16x1xf32> to vector<16x64xf32>
    %35 = arith.mulf %33, %34 : vector<16x64xf32>
    %36 = arith.mulf %28, %12 : vector<16x1xf32>
    %c0_20 = arith.constant 0 : index
    %c0_21 = arith.constant 0 : index
    %37 = vector.load %arg5[%c0_20, %c0_21] : memref<1x64xf32, #tpu.memory_space<vmem>>, vector<1x64xf32>
    %38 = vector.broadcast %36 : vector<16x1xf32> to vector<16x64xf32>
    %39 = vector.broadcast %37 : vector<1x64xf32> to vector<16x64xf32>
    %40 = arith.mulf %38, %39 : vector<16x64xf32>
    %41 = arith.subf %35, %40 : vector<16x64xf32>
    %c0_22 = arith.constant 0 : index
    %c0_23 = arith.constant 0 : index
    %42 = vector.load %arg6[%c0_22, %c0_23] : memref<1x64xf32, #tpu.memory_space<vmem>>, vector<1x64xf32>
    %43 = vector.broadcast %42 : vector<1x64xf32> to vector<16x64xf32>
    %44 = arith.addf %41, %43 : vector<16x64xf32>
    %c0_24 = arith.constant 0 : index
    %c0_25 = arith.constant 0 : index
    %45 = vector.load %arg7[%c0_24, %c0_25] : memref<16x64xf32, #tpu.memory_space<vmem>>, vector<16x64xf32>
    tpu.vector_store %arg7[%c0_24, %c0_25], %44 {strides = array<i32>} : memref<16x64xf32, #tpu.memory_space<vmem>>, vector<16x64xf32>,
    return
  }
  func.func @transform_0(%arg0: i32) -> (i32, i32, i32, i32) {
    %c0_i32 = arith.constant 0 : i32
    %c0_i32_0 = arith.constant 0 : i32
    %c0_i32_1 = arith.constant 0 : i32
    %c0_i32_2 = arith.constant 0 : i32
    return %arg0, %c0_i32, %c0_i32_0, %c0_i32_1 : i32, i32, i32, i32
  }
  func.func @transform_1(%arg0: i32) -> (i32, i32, i32, i32) {
    %c1_i32 = arith.constant 1 : i32
    %c0_i32 = arith.constant 0 : i32
    %c0_i32_0 = arith.constant 0 : i32
    %c0_i32_1 = arith.constant 0 : i32
    return %arg0, %c1_i32, %c0_i32, %c0_i32_0 : i32, i32, i32, i32
  }
  func.func @transform_2(%arg0: i32) -> (i32, i32) {
    %c0_i32 = arith.constant 0 : i32
    %c0_i32_0 = arith.constant 0 : i32
    %c0_i32_1 = arith.constant 0 : i32
    return %c0_i32, %c0_i32_0 : i32, i32
  }
  func.func @transform_3(%arg0: i32) -> (i32, i32) {
    %c0_i32 = arith.constant 0 : i32
    %c0_i32_0 = arith.constant 0 : i32
    %c0_i32_1 = arith.constant 0 : i32
    return %c0_i32, %c0_i32_0 : i32, i32
  }
  func.func @transform_4(%arg0: i32) -> (i32, i32) {
    %c0_i32 = arith.constant 0 : i32
    %c0_i32_0 = arith.constant 0 : i32
    %c0_i32_1 = arith.constant 0 : i32
    return %c0_i32, %c0_i32_0 : i32, i32
  }
  func.func @transform_5(%arg0: i32) -> (i32, i32) {
    %c0_i32 = arith.constant 0 : i32
    %c0_i32_0 = arith.constant 0 : i32
    %c0_i32_1 = arith.constant 0 : i32
    return %c0_i32, %c0_i32_0 : i32, i32
  }
  func.func @transform_6(%arg0: i32) -> (i32, i32) {
    %c0_i32 = arith.constant 0 : i32
    %c0_i32_0 = arith.constant 0 : i32
    return %arg0, %c0_i32 : i32, i32
  }
}

</mosaic_0001>

<bundles_post_ra>
// kernel: tpu_custom_call.1
= control target key start
LH: loop header
LB: loop body
LE: loop exit
PB: predicated region body
PF: predicated region fallthrough
CT: control target
= control target key end

     0   :  { %s1544_s0 = inlined_call_operand.hbm [shape: f32[8,2,4,64], index: 0, kind: input, shape index: {}]   ;;  %s1545_s1 = inlined_call_operand.hbm [shape: f32[8,2,4,64], index: 1, kind: input, shape index: {}]   ;;  %s1546_s2 = inlined_call_operand.hbm [shape: f32[64,64], index: 2, kind: input, shape index: {}]   ;;  %s1547_s3 = inlined_call_operand.hbm [shape: f32[64,64], index: 3, kind: input, shape index: {}]   ;;  %s1548_s4 = inlined_call_operand.vmem [shape: f32[1,64], index: 4, kind: input, shape index: {}]   ;;  %s1549_s5 = inlined_call_operand.vmem [shape: f32[1,64], index: 5, kind: input, shape index: {}]   ;;  %s1550_s6 = inlined_call_operand.hbm [shape: f32[32,64], index: 6, kind: output, shape index: {}]  }
   0x1   :  { %1558 = sst [smem:[#allocation18_spill]] %s1544_s0 }
   0x2   :  { %1559 = sst [smem:[#allocation19_spill]] %s1546_s2 }
   0x3   :  { %1560 = sst [smem:[#allocation20_spill]] %s1547_s3 }
   0x4   :  { %11 = vsyncpa [#allocation3], 0 }
   0x5   :  { %13 = vsyncpa [#allocation3 + $0x1], 0 }
   0x6   :  { %14 = vsyncpa [#allocation6], 0 }
   0x7   :  { %16 = vsyncpa [#allocation6 + $0x1], 0 }
   0x8   :  { %17 = vsyncpa [#allocation9], 0 }
   0x9   :  { %18 = vsyncpa [#allocation4], 0 }
   0xa   :  { %20 = vsyncpa [#allocation4 + $0x1], 0  ;;  %s1221_s21 = smov 0   ;;  %s1223_s22 = smov 0  }
   0xb   :  { %s1225_s23 = smov 0   ;;  %s1227_s24 = smov 0  }
   0xc LB: > { %1561 = sst [smem:[#allocation16_spill]] %s1169_s23  ;;  %s1242_s25 = sadd.s32 4294967295, %s1173_s24   ;;  %s1173_s24 = sphi %s1227_s24, %s1590_s24   ;;  %s1169_s23 = sphi %s1225_s23, %s1587_s23   ;;  %s1165_s22 = sphi %s1223_s22, %s1589_s22   ;;  %s1161_s21 = sphi %s1221_s21, %s1588_s21  }
   0xd   : > { %s767_s26 = sadd.s32 4294967294, %s1173_s24   ;;  %s1246_s27 = sadd.s32 1, %s1173_s24  }
   0xe   : > { %s33_s28 = sadd.s32 1, %s1169_s23  ;;  %s30_s29 = ssub.s32 %s1173_s24, %s1246_s27 }
   0xf   : > { %p40_p0 = scmp.ne.s32.totalorder %s1169_s23, %s1165_s22  ;;  %p31_p1 = scmp.eq.s32.totalorder %s30_s29, 0 }
  0x10   : > { %p41_p2 = scmp.eq.s32.totalorder %s1173_s24, 0  ;;  %p46_p3 = scmp.ne.s32.totalorder %s1165_s22, %s1161_s21 }
  0x11   : > { %p1551_p4 = scmp.eq.s32.totalorder %s1242_s25, 0  ;;  %p180_p7 = scmp.eq.s32.totalorder %s1242_s25, 1 }
  0x12   : > { %s1258_s30 = scalar_select %p31_p1, %s1169_s23, %s33_s28  }
  0x13   : > { %p1260_p5 = por %p41_p2, %p40_p0  ;;  %p1266_p6 = por %p1551_p4, %p46_p3 }
  0x14   : > { %1562 = sst [smem:[#allocation17_spill]] %s1258_s30  ;;  %p186_p8 = scmp.eq.s32.totalorder %s767_s26, 1 }
  0x15   : > { %s1563_s7 = scalar_select %p1260_p5, 1, 0 }
  0x16   : > { %s1564_s8 = scalar_select %p1266_p6, 1, 0 }
  0x17   : > { %p768_p9 = scmp.ge.s32.totalorder %s1173_s24, 1  ;;  %p193_p10 = scmp.lt.s32.totalorder %s1173_s24, 3 }
  0x18   : > { %p1273_p11 = por %p180_p7, %p40_p0  ;;  %p1277_p12 = por %p186_p8, %p46_p3 }
  0x19   : > { %p1281_p13 = pnand %p768_p9, %p193_p10  ;;  %s1175_s12 = smov [#allocation7]  }
  0x1a   : > { %s1565_s9 = scalar_select %p1273_p11, 1, 0 }
  0x1b   : > { %s1566_s10 = scalar_select %p1277_p12, 1, 0 }
  0x1c   : > { %s1567_s11 = scalar_select %p1281_p13, 1, 0 }
  0x1d   : > { %p906_p1 = pneg %p1281_p13  ;;  %s205_s13 = sshll.u32 %s1175_s12, 4  ;;  %s206_s13 = int_to_ptr.vmem [resolvable:$true] %s205_s13 }
  0x1e   : > { %s1176_s15 = smov [#allocation8]   ;;  %s1569_s2 = sld [smem:[#allocation19_spill]] }
  0x1f   : > { %p1289_p2 = pnand %p906_p1, %p1551_p4  ;;  %s218_s16 = sshll.u32 %s1176_s15, 4  ;;  %s219_s16 = int_to_ptr.vmem [resolvable:$true] %s218_s16 }
  0x21   : > { %p980_p8 = pneg %p1289_p2 }
  0x24   : > { %s978_s19 = scalar_lea.hbm %s1569_s2, 1024 }
  0x25   : > { %p979_p7 = scmp.ne.s32.totalorder %s1569_s2, %s978_s19  ;;  %p985_p1 = scmp.lt.u32.totalorder %s978_s19, %s1569_s2 }
  0x27   : > { %p981_p9 = pnand %p980_p8, %p979_p7 }
  0x29   : > { %p982_p10 = pneg %p981_p9 }
  0x2b   : > { %p987_p0 = pnand %p985_p1, %p982_p10 }
  0x2d   : > { %990 = shalt.err (!%p987_p0)
}
  0x2e   : > { %s991_s12 = scalar_lea.vmem %s206_s13, 1024  ;;  %p999_p11 = scmp.lt.s32.totalorder %s206_s13, %s206_s13 }
  0x2f   : > { %p992_p4 = scmp.ne.s32.totalorder %s206_s13, %s991_s12  ;;  %p1000_p6 = scmp.lt.s32.totalorder %s991_s12, %s991_s12 }
  0x31   : > { %p994_p3 = pnand %p992_p4, %p980_p8  ;;  %p1001_p13 = por %p1000_p6, %p999_p11 }
  0x33   : > { %p995_p12 = pneg %p994_p3 }
  0x35   : > { %p1002_p5 = pnand %p1001_p13, %p995_p12 }
  0x37   : > { %1005 = shalt.err (!%p1002_p5)
}
  0x38   : > { %s1177_s15 = smov 128   ;;  %s1178_s17 = smov 8  }
  0x39   : > { %909 = dma.hbm_to_vmem [thread:$0]  (!%p1289_p2), %s1569_s2, 1024, %s206_s13, [#allocation6], %s1177_s15, %s1177_s15, %s1178_s17  }
  0x3a   : > { %p1570_p4 = scmp.ne.s32.totalorder %s1563_s7, 0  ;;  %p1571_p0 = scmp.lt.s32.totalorder %s1173_s24, 2 }
  0x3b   : > { %s1573_s3 = sld [smem:[#allocation20_spill]] }
  0x3c   : > { %p1323_p3 = pnand %p1571_p0, %p1570_p4 }
  0x3e   : > { %s1572_s20 = scalar_select %p1323_p3, 1, 0 }
  0x41   : > { %s1006_s29 = scalar_lea.hbm %s1573_s3, 1024 }
  0x42   : > { %p1007_p5 = scmp.ne.s32.totalorder %s1573_s3, %s1006_s29  ;;  %p1013_p12 = scmp.lt.u32.totalorder %s1006_s29, %s1573_s3 }
  0x44   : > { %p1009_p6 = pnand %p1007_p5, %p980_p8 }
  0x46   : > { %p1010_p11 = pneg %p1009_p6 }
  0x48   : > { %p1015_p13 = pnand %p1013_p12, %p1010_p11 }
  0x4a   : > { %1018 = shalt.err (!%p1015_p13)
}
  0x4b   : > { %s1019_s18 = scalar_lea.vmem %s219_s16, 1024  ;;  %p1027_p1 = scmp.lt.s32.totalorder %s219_s16, %s219_s16 }
  0x4c   : > { %p1020_p7 = scmp.ne.s32.totalorder %s219_s16, %s1019_s18  ;;  %p1028_p4 = scmp.lt.s32.totalorder %s1019_s18, %s1019_s18 }
  0x4e   : > { %p1022_p9 = pnand %p1020_p7, %p980_p8  ;;  %p1029_p0 = por %p1028_p4, %p1027_p1 }
  0x50   : > { %p1023_p10 = pneg %p1022_p9 }
  0x52   : > { %p1030_p3 = pnand %p1029_p0, %p1023_p10 }
  0x54   : > { %1033 = shalt.err (!%p1030_p3)
}
  0x55   : > { %912 = dma.hbm_to_vmem [thread:$0]  (!%p1289_p2), %s1573_s3, 1024, %s219_s16, [#allocation9], %s1177_s15, %s1177_s15, %s1178_s17  }
  0x56   : > { %s238_s26 = sand.u32 1, %s1169_s23   ;;  %s1556_s29 = sshll.u32 %s1173_s24, 9 }
  0x57   : > { %s1350_s28 = sshll.u32 %s238_s26, 4  ;;  %s1574_s0 = sld [smem:[#allocation18_spill]] }
  0x58   : > { %s242_s7 = scalar_lea.vmem [#allocation2], %s1350_s28  ;;  %s1363_s16 = scalar_lea.sflag [#allocation3], %s238_s26 }
  0x59   : > { %s250_s18 = sshll.u32 %s242_s7, 4  ;;  %p1575_p8 = scmp.ne.s32.totalorder %s1572_s20, 0  ;;  %s1361_s18 = int_to_ptr.vmem [resolvable:$true] %s250_s18 }
  0x5b   : > { %p1036_p3 = pneg %p1575_p8 }
  0x5d   : > { %s1358_s14 = scalar_lea.hbm %s1574_s0, %s1556_s29  ;;  %s1039_s12 = scalar_lea.hbm %s1574_s0, 1024 }
  0x5e   : > { %s1034_s17 = scalar_lea.hbm %s1358_s14, 256  ;;  %p1040_p11 = scmp.lt.u32.totalorder %s1358_s14, %s1574_s0 }
  0x5f   : > { %p1035_p2 = scmp.ne.s32.totalorder %s1358_s14, %s1034_s17  ;;  %p1041_p12 = scmp.lt.u32.totalorder %s1039_s12, %s1034_s17 }
  0x60   : > { %p1043_p7 = scmp.lt.u32.totalorder %s1034_s17, %s1358_s14 }
  0x61   : > { %p1037_p5 = pnand %p1036_p3, %p1035_p2  ;;  %p1042_p13 = por %p1041_p12, %p1040_p11 }
  0x63   : > { %p1038_p6 = pneg %p1037_p5  ;;  %p1044_p9 = por %p1043_p7, %p1042_p13 }
  0x65   : > { %p1045_p10 = pnand %p1044_p9, %p1038_p6 }
  0x67   : > { %1048 = shalt.err (!%p1045_p10)
}
  0x68   : > { %s1049_s26 = scalar_lea.vmem %s1361_s18, 256  ;;  %s1179_s7 = smov [#allocation2]  }
  0x69   : > { %p1050_p1 = scmp.ne.s32.totalorder %s1361_s18, %s1049_s26  ;;  %s1054_s30 = sshll.u32 %s1179_s7, 4  ;;  %s1055_s30 = int_to_ptr.vmem [resolvable:$false] %s1054_s30 }
  0x6a   : > { %s1056_s29 = scalar_lea.vmem %s1055_s30, 512  ;;  %p1057_p2 = scmp.lt.s32.totalorder %s1361_s18, %s1055_s30 }
  0x6b   : > { %p1052_p4 = pnand %p1050_p1, %p1036_p3  ;;  %p1058_p5 = scmp.lt.s32.totalorder %s1056_s29, %s1049_s26 }
  0x6d   : > { %p1053_p0 = pneg %p1052_p4  ;;  %p1059_p11 = por %p1058_p5, %p1057_p2 }
  0x6f   : > { %p1060_p12 = pnand %p1059_p11, %p1053_p0 }
  0x71   : > { %1063 = shalt.err (!%p1060_p12)
}
  0x72   : > { %s1180_s17 = smov 64   ;;  %s1181_s19 = smov 4  }
  0x73   : > { %916 = dma.hbm_to_vmem [thread:$0]  (!%p1575_p8), %s1358_s14, 256, %s1361_s18, %s1363_s16, %s1177_s15, %s1180_s17, %s1181_s19  }
  0x74   : > { %s1576_s12 = sshll.u32 %s1173_s24, 9  ;;  %s264_s30 = scalar_lea.vmem [#allocation5], %s1350_s28 }
  0x75   : > { %s691_s7 = scalar_lea.hbm %s1545_s1, %s1576_s12  ;;  %s273_s29 = sshll.u32 %s264_s30, 4  ;;  %s1402_s29 = int_to_ptr.vmem [resolvable:$true] %s273_s29 }
  0x76   : > { %s1400_s0 = scalar_lea.hbm %s691_s7, 64  ;;  %s260_s2 = sand.u32 1, %s1173_s24  }
  0x77   : > { %s1405_s3 = scalar_lea.sflag [#allocation6], %s260_s2  ;;  %s1094_s23 = scalar_lea.hbm %s691_s7, 320 }
  0x78   : > { %p1065_p6 = scmp.ne.s32.totalorder %s1400_s0, %s1094_s23  ;;  %s1069_s28 = scalar_lea.hbm %s1545_s1, 1024 }
  0x79   : > { %p1070_p9 = scmp.lt.u32.totalorder %s1400_s0, %s1545_s1  ;;  %p1071_p10 = scmp.lt.u32.totalorder %s1069_s28, %s1094_s23 }
  0x7a   : > { %p1067_p13 = pnand %p1065_p6, %p1036_p3  ;;  %p1073_p4 = scmp.lt.u32.totalorder %s1094_s23, %s1400_s0 }
  0x7b   : > { %p1072_p1 = por %p1071_p10, %p1070_p9 }
  0x7c   : > { %p1068_p7 = pneg %p1067_p13 }
  0x7d   : > { %p1074_p0 = por %p1073_p4, %p1072_p1 }
  0x7f   : > { %p1075_p2 = pnand %p1074_p0, %p1068_p7 }
  0x81   : > { %1078 = shalt.err (!%p1075_p2)
}
  0x82   : > { %s1079_s2 = scalar_lea.vmem %s1402_s29, 256  ;;  %s1182_s13 = smov [#allocation5]  }
  0x83   : > { %p1080_p5 = scmp.ne.s32.totalorder %s1402_s29, %s1079_s2  ;;  %s1084_s26 = sshll.u32 %s1182_s13, 4  ;;  %s1085_s26 = int_to_ptr.vmem [resolvable:$false] %s1084_s26 }
  0x84   : > { %s1086_s7 = scalar_lea.vmem %s1085_s26, 512  ;;  %p1087_p6 = scmp.lt.s32.totalorder %s1402_s29, %s1085_s26 }
  0x85   : > { %p1082_p11 = pnand %p1080_p5, %p1036_p3  ;;  %p1088_p13 = scmp.lt.s32.totalorder %s1086_s7, %s1079_s2 }
  0x87   : > { %p1083_p12 = pneg %p1082_p11  ;;  %p1089_p9 = por %p1088_p13, %p1087_p6 }
  0x89   : > { %p1090_p10 = pnand %p1089_p9, %p1083_p12 }
  0x8b   : > { %1093 = shalt.err (!%p1090_p10)
}
  0x8c   : > { %919 = dma.hbm_to_vmem [thread:$0]  (!%p1575_p8), %s1400_s0, 256, %s1402_s29, %s1405_s3, %s1177_s15, %s1180_s17, %s1181_s19  }
  0x8d   : > { %p1577_p3 = scmp.ne.s32.totalorder %s1567_s11, 0 }
  0x8e   : > { %s1436_s23 = sand.u32 (!%p1577_p3), 1, %s1165_s22   ;;  %p1578_p7 = scmp.ne.s32.totalorder (!%p1577_p3), %s1564_s8, 0 }
  0x8f   : > { %285 = sbr.rel (%p1577_p3) target bundleno = 417 (0x1a1), region = 44  ;;  %s1439_s30 = sshll.u32 (!%p1577_p3), %s1436_s23, 4 }
  0x90   : > { %s288_s20 = scalar_lea.sflag (!%p1577_p3), [#allocation3], %s1436_s23  ;;  %s1443_s14 = scalar_lea.vmem (!%p1577_p3), [#allocation2], %s1439_s30 }
  0x96   : > { %1140 = dma.done.wait (%p1578_p7), %s288_s20, 256  }
  0x97   : > { %1142 = vsyncadd (%p1578_p7), %s288_s20, 4294967040  ;;  %s296_s0 = sand.u32 1, %s1242_s25   ;;  %s1451_s11 = scalar_lea.vmem [#allocation5], %s1439_s30 }
  0x98   : > { %s297_s3 = scalar_lea.sflag [#allocation6], %s296_s0 }
  0x99   : > { %1144 = dma.done.wait (%p1578_p7), %s297_s3, 256  }
  0x9a   : > { %1146 = vsyncadd (%p1578_p7), %s297_s3, 4294967040  ;;  %p1579_p8 = scmp.eq.s32.totalorder %s1242_s25, 0 }
  0x9c   : > { %1148 = dma.done.wait (%p1579_p8), [#allocation6], 1024   ;;  %p1580_p1 = pmov %p1579_p8 }
  0x9e   : > { %1150 = vsyncadd (%p1580_p1), [#allocation6], 4294966272  ;;  %p1581_p4 = pmov %p1580_p1 }
  0x9f   : > { %p1582_p0 = pmov %p1580_p1 }
  0xa0   : > { %1152 = dma.done.wait (%p1581_p4), [#allocation9], 1024  }
  0xa1   : > { %1154 = vsyncadd (%p1582_p0), [#allocation9], 4294966272  ;;  %v444_v0 = vld [vmem:[#allocation8] sm:$0xff]  ;;  %v445_v1 = vld [vmem:[#allocation8 + $0x8] sm:$0xff]  ;;  %vm361_vm0 = vcmask 523264   ;;  %s799_s29 = sshll.u32 %s1242_s25, 8 }
  0xa2   : > { %v436_v2 = vld [vmem:[#allocation7] sm:$0xff]  ;;  %v858_v3 = vpack.c.bf16 %v445_v1, %v444_v0  ;;  %v437_v4 = vld [vmem:[#allocation7 + $0x8] sm:$0xff]  ;;  %v446_v5 = vld [vmem:[#allocation8 + $0x10] sm:$0xff]  ;;  %s341_s18 = scalar_lea.vmem [#allocation10], %s1439_s30  ;;  %s1496_s2 = scalar_lea.hbm %s1550_s6, %s799_s29 }
  0xa3   : > { %v447_v6 = vld [vmem:[#allocation8 + $0x18] sm:$0xff]  ;;  %v874_v7 = vpack.c.bf16 %v437_v4, %v436_v2  ;;  %v438_v9 = vld [vmem:[#allocation7 + $0x10] sm:$0xff]  ;;  %v448_v11 = vld [vmem:[#allocation8 + $0x20] sm:$0xff]  ;;  %s650_s28 = sshll.u32 %s341_s18, 4  ;;  %s637_s25 = scalar_lea.sflag [#allocation4], %s1436_s23  ;;  %s1498_s28 = int_to_ptr.vmem [resolvable:$true] %s650_s28 }
  0xa4   : > { %v862_v8 = vpack.c.bf16 %v447_v6, %v446_v5  ;;  %v439_v10 = vld [vmem:[#allocation7 + $0x18] sm:$0xff]  ;;  %859 = vmatprep.subr.bf16.mxu1 %v858_v3  ;;  %v449_v13 = vld [vmem:[#allocation8 + $0x28] sm:$0xff]  ;;  %v440_v14 = vld [vmem:[#allocation7 + $0x20] sm:$0xff]  ;;  %s1095_s13 = scalar_lea.vmem %s1498_s28, 256  ;;  %p1583_p5 = scmp.ne.s32.totalorder %s1565_s9, 0 }
  0xa5   : > { %v878_v12 = vpack.c.bf16 %v439_v10, %v438_v9  ;;  %v441_v15 = vld [vmem:[#allocation7 + $0x28] sm:$0xff]  ;;  %875 = vmatprep.subr.bf16.mxu0 %v874_v7  ;;  %861 = vmatpush3.bf16.msra.mxu1 %v858_v3  ;;  %v450_v16 = vld [vmem:[#allocation8 + $0x30] sm:$0xff]  ;;  %v451_v17 = vld [vmem:[#allocation8 + $0x38] sm:$0xff]  ;;  %v866_v18 = vpack.c.bf16 %v449_v13, %v448_v11  ;;  %p1096_p2 = scmp.ne.s32.totalorder %s1498_s28, %s1095_s13  ;;  %s1183_s26 = smov [#allocation10]  }
  0xa6   : > { %877 = vmatpush3.bf16.msra.mxu0 %v874_v7  ;;  %863 = vmatprep.subr.bf16.mxu1 %v862_v8  ;;  %v442_v19 = vld [vmem:[#allocation7 + $0x30] sm:$0xff]  ;;  %v443_v20 = vld [vmem:[#allocation7 + $0x38] sm:$0xff]  ;;  %v882_v23 = vpack.c.bf16 %v441_v15, %v440_v14  ;;  %v870_v35 = vpack.c.bf16 %v451_v17, %v450_v16  ;;  %s1099_s7 = sshll.u32 %s1183_s26, 4  ;;  %s1100_s7 = int_to_ptr.vmem [resolvable:$false] %s1099_s7 }
  0xa7   : > { %v349_v21 = vld [vmem:[%s1451_s11] sm:$0xf]  ;;  %v350_v22 = vld [vmem:[%s1451_s11 + $0x4] sm:$0xf]  ;;  %879 = vmatprep.subr.bf16.mxu0 %v878_v12  ;;  %v351_v27 = vld [vmem:[%s1451_s11 + $0x8] sm:$0xf]  ;;  %v886_v39 = vpack.c.bf16 %v443_v20, %v442_v19  ;;  %p1097_p11 = pnand %p1096_p2, %p1583_p5  ;;  %p1102_p6 = scmp.lt.s32.totalorder %s1498_s28, %s1100_s7 }
  0xa8   : > { %v372_v24 = vcombine.low %v349_v21, %v350_v22  ;;  %v345_v25 = vld [vmem:[%s1443_s14] sm:$0xf]  ;;  %v346_v26 = vld [vmem:[%s1443_s14 + $0x4] sm:$0xf]  ;;  %v352_v29 = vld [vmem:[%s1451_s11 + $0xc] sm:$0xf]  ;;  %v404_v42 = vmul.f32 %v349_v21, %v349_v21  ;;  %v405_v43 = vmul.f32 %v350_v22, %v350_v22  ;;  %v406_v48 = vmul.f32 %v351_v27, %v351_v27 }
  0xa9   : > { %v357_v28 = vcombine.low %v345_v25, %v346_v26  ;;  %v347_v30 = vld [vmem:[%s1443_s14 + $0x8] sm:$0xf]  ;;  %v348_v31 = vld [vmem:[%s1443_s14 + $0xc] sm:$0xf]  ;;  %865 = vmatpush3.bf16.msra.mxu1 %v862_v8  ;;  %v386_v32 = vmul.f32 %v345_v25, %v345_v25  ;;  %v387_v33 = vmul.f32 %v346_v26, %v346_v26  ;;  %v373_v40 = vcombine.low %v351_v27, %v352_v29  ;;  %p1098_p12 = pneg %p1097_p11  ;;  %s1101_s30 = scalar_lea.vmem %s1100_s7, 512 }
  0xaa   : > { %836 = vmatprep.mubr.msk.f32.mxu1 %vm361_vm0, %v372_v24  ;;  %v376_v34 = vsel %vm361_vm0, %v372_v24, 0.0  ;;  %881 = vmatpush3.bf16.msra.mxu0 %v878_v12  ;;  %v388_v37 = vmul.f32 %v347_v30, %v347_v30  ;;  %v389_v38 = vmul.f32 %v348_v31, %v348_v31  ;;  %v358_v41 = vcombine.low %v347_v30, %v348_v31  ;;  %v789_v24 = vld [vmem:[%s1548_s4] ss:$0 sm:$0xff]  ;;  %p1103_p13 = scmp.lt.s32.totalorder %s1101_s30, %s1095_s13 }
  0xab   : > { %867 = vmatprep.subr.bf16.mxu1 %v866_v18  ;;  %v362_v36 = vsel %vm361_vm0, %v357_v28, 0.0  ;;  %883 = vmatprep.subr.bf16.mxu0 %v882_v23  ;;  %v379_v45 = vsel %vm361_vm0, %v373_v40, 0.0  ;;  %v394_v46 = vcombine.low %v386_v32, %v387_v33  ;;  %v407_v49 = vmul.f32 %v352_v29, %v352_v29  ;;  %v790_v29 = vld [vmem:[%s1549_s5] ss:$0 sm:$0xff] }
  0xac   : > { %855 = vmatprep.mubr.msk.f32.mxu0 %vm361_vm0, %v357_v28  ;;  %363 = vadd.xlane.f32.xlu0 %v362_v36  ;;  %v365_v44 = vsel %vm361_vm0, %v358_v41, 0.0  ;;  %v395_v47 = vcombine.low %v388_v37, %v389_v38  ;;  %v412_v51 = vcombine.low %v404_v42, %v405_v43  ;;  %p1104_p9 = por %p1103_p13, %p1102_p6 }
  0xad   : > { %377 = vadd.xlane.f32.xlu1 %v376_v34  ;;  %869 = vmatpush3.bf16.msra.mxu1 %v866_v18  ;;  %v398_v50 = vsel %vm361_vm0, %v394_v46, 0.0  ;;  %v413_v53 = vcombine.low %v406_v48, %v407_v49 }
  0xae   : > { %885 = vmatpush3.bf16.msra.mxu0 %v882_v23  ;;  %871 = vmatprep.subr.bf16.mxu1 %v870_v35  ;;  %v401_v52 = vsel %vm361_vm0, %v395_v47, 0.0  ;;  %v416_v54 = vsel %vm361_vm0, %v412_v51, 0.0  ;;  %p1105_p10 = pnand %p1104_p9, %p1098_p12 }
  0xaf   : > { %887 = vmatprep.subr.bf16.mxu0 %v886_v39  ;;  %v419_v55 = vsel %vm361_vm0, %v413_v53, 0.0 }
  0xb0   : > { %366 = vadd.xlane.f32.xlu0 %v365_v44 }
  0xb1   : > { %380 = vadd.xlane.f32.xlu1 %v379_v45  ;;  %873 = vmatpush3.bf16.msra.mxu1 %v870_v35 }
  0xb2   : > { %889 = vmatpush3.bf16.msra.mxu0 %v886_v39 }
  0xb4   : > { %837 = vmatmul.mubr.msk.f32.vlgmr.msra.gmra.mrb[0].mxu1 %vm361_vm0, %v373_v40  ;;  %399 = vadd.xlane.f32.xlu0 %v398_v50 }
  0xb5   : > { %856 = vmatmul.mubr.msk.f32.vlgmr.msra.gmra.mrb[0].mxu0 %vm361_vm0, %v358_v41  ;;  %402 = vadd.xlane.f32.xlu1 %v401_v52 }
  0xb8   : > { %417 = vadd.xlane.f32.xlu0 %v416_v54 }
  0xb9   : > { %420 = vadd.xlane.f32.xlu1 %v419_v55 }
 0x139   : > { %v364_v57 = vpop.xlane.xlu0 %363 }
 0x13a   : > { %v378_v56 = vpop.xlane.xlu1 %377 }
 0x13b   : > { %v382_v63 = vadd.f32 %v378_v56, %v364_v57 }
 0x13d   : > { %v367_v59 = vpop.xlane.xlu0 %366  ;;  %v384_v4 = vmul.f32 0.0078125, %v382_v63 }
 0x13e   : > { %v381_v58 = vpop.xlane.xlu1 %380 }
 0x13f   : > { %v383_v62 = vadd.f32 %v381_v58, %v367_v59  ;;  %v426_v8 = vmul.f32 %v384_v4, %v384_v4 }
 0x141   : > { %v400_v61 = vpop.xlane.xlu0 %399  ;;  %v385_v2 = vmul.f32 0.0078125, %v383_v62 }
 0x142   : > { %v403_v60 = vpop.xlane.xlu1 %402 }
 0x143   : > { %v427_v6 = vmul.f32 %v385_v2, %v385_v2 }
 0x145   : > { %v418_v1 = vpop.xlane.xlu0 %417 }
 0x146   : > { %v421_v0 = vpop.xlane.xlu1 %420  ;;  %v422_v5 = vadd.f32 %v418_v1, %v400_v61 }
 0x147   : > { %v423_v3 = vadd.f32 %v421_v0, %v403_v60 }
 0x148   : > { %v424_v9 = vmul.f32 0.0078125, %v422_v5 }
 0x149   : > { %v425_v7 = vmul.f32 0.0078125, %v423_v3 }
 0x14a   : > { %v428_v11 = vsub.f32 %v424_v9, %v426_v8 }
 0x14b   : > { %v429_v10 = vsub.f32 %v425_v7, %v427_v6 }
 0x14c   : > { %v430_v13 = vmax.f32 %v428_v11, 0.0 }
 0x14d   : > { %v431_v12 = vmax.f32 %v429_v10, 0.0 }
 0x14e   : > { %v432_v15 = vadd.f32 1e-05, %v430_v13 }
 0x14f   : > { %v433_v14 = vadd.f32 1e-05, %v431_v12 }
 0x151   : > { %974 = vrsqrt.f32 %v433_v14 }
 0x152   : > { %976 = vrsqrt.f32 %v432_v15 }
 0x15b   : > { %v975_v16 = vpop.eup %974 }
 0x15c   : > { %v977_v17 = vpop.eup %976  ;;  %v613_v19 = vmul.f32 %v975_v16, %v385_v2 }
 0x15d   : > { %v612_v22 = vmul.f32 %v977_v17, %v384_v4 }
 0x15e   : > { %v622_v28 = vmul.f32 %v789_v24, %v613_v19 }
 0x15f   : > { %v621_v31 = vmul.f32 %v789_v24, %v612_v22 }
 0x187   : > { %v838_v18 = vpop.f32.mrb[0].mxu1 }
 0x188   : > { %v857_v20 = vpop.f32.mrb[0].mxu0  ;;  %v522_v21 = vpop.f32.mrb[1].mxu1 }
 0x189   : > { %v607_v23 = vadd.f32 %v857_v20, %v838_v18  ;;  %v601_v25 = vpop.f32.mrb[1].mxu0 }
 0x18a   : > { %v602_v26 = vadd.f32 %v601_v25, %v522_v21 }
 0x18b   : > { %v611_v27 = vmul.f32 %v975_v16, %v607_v23 }
 0x18c   : > { %v610_v30 = vmul.f32 %v977_v17, %v602_v26 }
 0x18d   : > { %v624_v32 = vsub.f32 %v611_v27, %v622_v28 }
 0x18e   : > { %v623_v33 = vsub.f32 %v610_v30, %v621_v31 }
 0x18f   : > { %v633_v34 = vadd.f32 %v790_v29, %v624_v32 }
 0x190   : > { %v632_v35 = vadd.f32 %v790_v29, %v623_v33 }
 0x191   : > { %635 = vst.msk [vmem:[%s341_s18 + $0x8] sm:$0xff] %vm361_vm0, %v633_v34 }
 0x192   : > { %634 = vst.msk [vmem:[%s341_s18] sm:$0xff] %vm361_vm0, %v632_v35 }
 0x193   : > { %1108 = shalt.err (!%p1105_p10)
}
 0x194   : > { %s1109_s20 = scalar_lea.hbm %s1496_s2, 256  ;;  %s1113_s3 = scalar_lea.hbm %s1550_s6, 512 }
 0x195   : > { %p1110_p3 = scmp.ne.s32.totalorder %s1496_s2, %s1109_s20  ;;  %p1114_p1 = scmp.lt.u32.totalorder %s1496_s2, %s1550_s6 }
 0x196   : > { %p1115_p4 = scmp.lt.u32.totalorder %s1113_s3, %s1109_s20  ;;  %p1117_p2 = scmp.lt.u32.totalorder %s1109_s20, %s1496_s2 }
 0x197   : > { %p1111_p7 = pnand %p1110_p3, %p1583_p5 }
 0x198   : > { %p1116_p0 = por %p1115_p4, %p1114_p1 }
 0x199   : > { %p1112_p8 = pneg %p1111_p7 }
 0x19a   : > { %p1118_p11 = por %p1117_p2, %p1116_p0 }
 0x19c   : > { %p1119_p12 = pnand %p1118_p11, %p1112_p8 }
 0x19e   : > { %1122 = shalt.err (!%p1119_p12)
}
 0x19f   : > { %s1184_s15 = smov 128   ;;  %s1185_s17 = smov 8  }
 0x1a0   : > { %904 = dma.vmem_to_hbm [thread:$0]  (%p1583_p5), %s1498_s28, 256, %s1496_s2, %s637_s25, %s1184_s15, %s1184_s15, %s1185_s17  }
 0x1a1 PF: > { %s665_s19 = sand.u32 1, %s1161_s21   ;;  %p1584_p6 = scmp.ne.s32.totalorder %s1566_s10, 0 }
 0x1a2   : > { %p1585_p13 = scmp.ge.s32.totalorder %s1173_s24, 2  ;;  %s666_s29 = scalar_lea.sflag [#allocation4], %s665_s19 }
 0x1a4   : > { %p921_p9 = pnand %p1585_p13, %p1584_p6 }
 0x1a6   : > { %1156 = dma.done.wait (!%p921_p9), %s666_s29, 256  }
 0x1a7   : > { %1158 = vsyncadd (!%p921_p9), %s666_s29, 4294967040  ;;  %s1586_s18 = sld [smem:[#allocation16_spill]]  ;;  %s1587_s23 = sld [smem:[#allocation17_spill]] }
 0x1a8   : > { %p23_p10 = scmp.ge.s32.totalorder %s1246_s27, 4   ;;  %s1588_s21 = smov %s1165_s22 }
 0x1a9   : > { %s1590_s24 = smov %s1246_s27 }
 0x1aa   :  { %25 = sbr.rel (!%p23_p10) target bundleno = 12 (0xc), region = 110 }
 0x1ad   : > { %s1589_s22 = smov %s1586_s18 }
 0x1b1   :  { %671 = vsyncpa [#allocation3], 1 }
 0x1b2   :  { %673 = vsyncpa [#allocation3 + $0x1], 1 }
 0x1b3   :  { %674 = vsyncpa [#allocation6], 1 }
 0x1b4   :  { %676 = vsyncpa [#allocation6 + $0x1], 1 }
 0x1b5   :  { %677 = vsyncpa [#allocation9], 1 }
 0x1b6   :  { %678 = vsyncpa [#allocation4], 1 }
 0x1b7   :  { %680 = vsyncpa [#allocation4 + $0x1], 1 }

</bundles_post_ra>
